<compile_context>
chip_gen: v7x
topology: tpu7x:2x2x1
jax: 0.10.0
libtpu: 0.0.40
codegen_flags: <defaults>
</compile_context>

<pallas_src>
import jax
import jax.numpy as jnp
from jax.experimental import pallas as pl
from jax.experimental.pallas import tpu as pltpu


# ---------------------------------------------------------------------------
# Fused Pallas kernel: normalize A, encode both graph sets, build pooling
# matrix in VMEM, pool, and run the similarity head — one pallas_call.
# ---------------------------------------------------------------------------

def _fused_forward_kernel(x_ref, a_ref, batch_ref, w_enc_ref, small_ref,
                          w1_ref, o_ref):
    f32 = jnp.float32
    two_n = a_ref.shape[0]          # total nodes across both graph sets
    b = o_ref.shape[1]              # num_graphs (graph pairs)
    two_b = 2 * b

    # --- in-VMEM adjacency normalization: A_norm = (A + I) / row_sum --------
    a_raw = a_ref[...]                                               # [2N, 2N]
    row_sum = jnp.sum(a_raw, axis=-1, keepdims=True)
    a_norm = a_raw / jnp.maximum(row_sum, 1.0)

    # --- one block-diagonal aggregation matmul for BOTH graph sets ----------
    agg = jnp.dot(a_norm, x_ref[...], preferred_element_type=f32)    # [2N, F]

    # --- encoder linear + ReLU ----------------------------------------------
    b_enc = small_ref[0:1, :]                                        # [1, H]
    h = jnp.dot(agg, w_enc_ref[...], preferred_element_type=f32)
    h = jnp.maximum(h + b_enc, 0.0)                                  # [2N, H]

    # --- in-VMEM pooling matrix: P[g, n] = (batch[n] == g) / count[g] -------
    rows = jax.lax.broadcasted_iota(jnp.int32, (two_b, two_n), 0)
    batch_b = jnp.broadcast_to(batch_ref[...], (two_b, two_n))
    mask = (rows == batch_b).astype(f32)                             # [2B, 2N]
    counts = jnp.sum(mask, axis=-1, keepdims=True)
    pool = mask / jnp.maximum(counts, 1.0)

    # one pooling matmul for both graph sets
    z = jnp.dot(pool, h, preferred_element_type=f32)                 # [2B, H]
    z1 = z[:b]                                                       # [B, H]
    z2 = z[b:]                                                       # [B, H]

    # --- similarity head: concat folded in-VMEM -> one K=4H matmul ----------
    combined = jnp.concatenate([z1, z2, jnp.abs(z1 - z2), z1 * z2], axis=-1)
    b1 = small_ref[1:2, :]                                           # [1, H]
    hid = jnp.dot(combined, w1_ref[...], preferred_element_type=f32)
    hid = jnp.maximum(hid + b1, 0.0)                                 # [B, H]

    # H -> 1 projection on the VPU (an MXU matmul here would be >99% pad)
    w2 = small_ref[2:3, :]                                           # [1, H]
    b2 = small_ref[3:4, 0:1]                                         # [1, 1]
    scores = jnp.sum(hid * w2, axis=-1, keepdims=True) + b2          # [B, 1]

    # lane-dense (1, B) store via a tiny eye-mask sublane reduce (B is tiny).
    # TODO(synk): for large B switch to a direct (B,1) store or pad to (1,128).
    r = jax.lax.broadcasted_iota(jnp.int32, (b, b), 0)
    c = jax.lax.broadcasted_iota(jnp.int32, (b, b), 1)
    eye = (r == c).astype(f32)
    o_ref[...] = jnp.sum(scores * eye, axis=0, keepdims=True).astype(o_ref.dtype)


# ---------------------------------------------------------------------------
# Graph-structure preprocessing: ONLY the scatter-add stays in XLA.
# ---------------------------------------------------------------------------
# TODO(synk): building the raw (A + I) counts from edge_index is a scatter-add
# with no clean dense Pallas-TPU equivalent; it (plus trivial concats) stays
# in XLA and feeds the single fused Pallas kernel.

def _preprocess(x1, edge_index1, batch1, x2, edge_index2, batch2, num_graphs):
    n1 = x1.shape[0]
    n_total = n1 + x2.shape[0]

    self_loops = jnp.arange(n_total, dtype=jnp.int32)
    src = jnp.concatenate([edge_index1[0], edge_index2[0] + n1, self_loops])
    dst = jnp.concatenate([edge_index1[1], edge_index2[1] + n1, self_loops])
    # block-diagonal raw (A + I) counts for both graph sets, one scatter-add
    a_raw = jnp.zeros((n_total, n_total), jnp.float32).at[dst, src].add(1.0)

    x = jnp.concatenate([x1, x2], axis=0)                            # [2N, F]
    batch_all = jnp.concatenate([batch1, batch2 + num_graphs]).astype(jnp.int32)
    return x, a_raw, batch_all.reshape(1, n_total)


# ---------------------------------------------------------------------------
# Forward wrapper (single pallas_call, 6 input refs, full-array VMEM blocks)
# ---------------------------------------------------------------------------

def graph_similarity_forward(params, x1, edge_index1, batch1,
                             x2, edge_index2, batch2, num_graphs):
    x, a_raw, batch_all = _preprocess(x1, edge_index1, batch1,
                                      x2, edge_index2, batch2, num_graphs)

    vmem_spec = pl.BlockSpec(memory_space=pltpu.MemorySpace.VMEM)
    out = pl.pallas_call(
        _fused_forward_kernel,
        out_shape=jax.ShapeDtypeStruct((1, num_graphs), jnp.float32),
        in_specs=[vmem_spec] * 6,
        out_specs=vmem_spec,
        compiler_params=pltpu.CompilerParams(vmem_limit_bytes=32 * 1024 * 1024),
    )(x, a_raw, batch_all,
      params["w_enc"], params["small"], params["w1"])
    return out[0]  # (num_graphs,)  == classifier(combined).squeeze(-1)


# ---------------------------------------------------------------------------
# Pure-JAX reference (same math) for a correctness check
# ---------------------------------------------------------------------------

def _reference_forward(params, x1, edge_index1, batch1,
                       x2, edge_index2, batch2, num_graphs):
    x, a_raw, batch_all = _preprocess(x1, edge_index1, batch1,
                                      x2, edge_index2, batch2, num_graphs)
    a_norm = a_raw / jnp.maximum(jnp.sum(a_raw, axis=-1, keepdims=True), 1.0)
    agg = a_norm @ x
    h = jnp.maximum(agg @ params["w_enc"] + params["small"][0], 0.0)
    onehot = jax.nn.one_hot(batch_all[0], 2 * num_graphs,
                            dtype=jnp.float32).T                     # [2B, 2N]
    counts = jnp.sum(onehot, axis=-1, keepdims=True)
    z = (onehot / jnp.maximum(counts, 1.0)) @ h
    z1, z2 = z[:num_graphs], z[num_graphs:]
    combined = jnp.concatenate([z1, z2, jnp.abs(z1 - z2), z1 * z2], axis=-1)
    hid = jnp.maximum(combined @ params["w1"] + params["small"][1], 0.0)
    return jnp.sum(hid * params["small"][2], axis=-1) + params["small"][3, 0]


# ---------------------------------------------------------------------------
# Main
# ---------------------------------------------------------------------------

if __name__ == "__main__":
    key = jax.random.PRNGKey(0)
    F_IN = 16          # node feature dim
    HIDDEN = 32        # hidden_dim
    NODES_PER_GRAPH = 8
    NUM_GRAPHS = 2
    N = NODES_PER_GRAPH * NUM_GRAPHS   # nodes per graph set

    ks = jax.random.split(key, 8)

    # deterministic parameters, stored in kernel-ready shapes
    b_enc = jax.random.normal(ks[1], (HIDDEN,), jnp.float32) * 0.1
    b1 = jax.random.normal(ks[3], (HIDDEN,), jnp.float32) * 0.1
    w2 = jax.random.normal(ks[4], (HIDDEN,), jnp.float32) * 0.1
    b2 = jax.random.normal(ks[5], (), jnp.float32) * 0.1

    # packed small-param block: rows [b_enc; b1; w2; b2@col0; zeros]
    small = jnp.zeros((8, HIDDEN), jnp.float32)
    small = small.at[0].set(b_enc).at[1].set(b1).at[2].set(w2).at[3, 0].set(b2)

    params = {
        "w_enc": jax.random.normal(ks[0], (F_IN, HIDDEN), jnp.float32) * 0.1,
        "w1": jax.random.normal(ks[2], (4 * HIDDEN, HIDDEN), jnp.float32) * 0.1,
        "small": small,
    }

    # deterministic inputs: two batched graph sets, ring topology per graph
    x1 = jax.random.normal(ks[6], (N, F_IN), jnp.float32)
    x2 = jax.random.normal(ks[7], (N, F_IN), jnp.float32)

    def ring_edges(nodes_per_graph, num_graphs):
        srcs, dsts = [], []
        for g in range(num_graphs):
            base = g * nodes_per_graph
            for i in range(nodes_per_graph):
                s = base + i
                d = base + (i + 1) % nodes_per_graph
                srcs += [s, d]
                dsts += [d, s]
        return jnp.array([srcs, dsts], dtype=jnp.int32)

    edge_index = ring_edges(NODES_PER_GRAPH, NUM_GRAPHS)
    batch = jnp.repeat(jnp.arange(NUM_GRAPHS, dtype=jnp.int32),
                       NODES_PER_GRAPH)

    fwd = jax.jit(graph_similarity_forward, static_argnames=("num_graphs",))
    out = fwd(params, x1, edge_index, batch, x2, edge_index, batch,
              num_graphs=NUM_GRAPHS)
    out = jax.block_until_ready(out)
    assert out.shape == (NUM_GRAPHS,), out.shape

    ref = _reference_forward(params, x1, edge_index, batch,
                             x2, edge_index, batch, NUM_GRAPHS)
    assert jnp.allclose(out, ref, rtol=1e-2, atol=1e-2), (out, ref)

    print("KERNEL_OK")
</pallas_src>

<mosaic_0001>
module attributes {stable_mosaic.version = 11 : i64} {
  func.func private @main(%arg0: i32) attributes {dimension_semantics = [#tpu.dimension_semantics<core_parallel>], iteration_bounds = array<i64: 2>, tpu.core_type = #tpu.core_type<sc_scalar_subcore>, window_params = []} {
    return
  }
}

module attributes {stable_mosaic.version = 11 : i64} {
  func.func private @main(%arg0: i32) attributes {dimension_semantics = [#tpu.dimension_semantics<core_parallel>], iteration_bounds = array<i64: 2>, tpu.core_type = #tpu.core_type<sc_scalar_subcore>, window_params = []} {
    return
  }
}

module attributes {stable_mosaic.version = 11 : i64} {
  func.func @_fused_forward_kernel(%arg0: memref<32x16xf32, #tpu.memory_space<vmem>>, %arg1: memref<32x32xf32, #tpu.memory_space<vmem>>, %arg2: memref<1x32xi32, #tpu.memory_space<vmem>>, %arg3: memref<16x32xf32, #tpu.memory_space<vmem>>, %arg4: memref<8x32xf32, #tpu.memory_space<vmem>>, %arg5: memref<128x32xf32, #tpu.memory_space<vmem>>, %arg6: memref<1x2xf32, #tpu.memory_space<vmem>>) attributes {dimension_semantics = [], scalar_prefetch = 0 : i64, scratch_operands = 0 : i64, tpu.core_type = #tpu.core_type<tc>} {
    %c0 = arith.constant 0 : index
    %c0_0 = arith.constant 0 : index
    %0 = vector.load %arg1[%c0, %c0_0] : memref<32x32xf32, #tpu.memory_space<vmem>>, vector<32x32xf32>
    %cst = arith.constant dense<0.000000e+00> : vector<32xf32>
    %1 = vector.multi_reduction <add>, %0, %cst [1] : vector<32x32xf32> to vector<32xf32>
    %2 = vector.shape_cast %1 : vector<32xf32> to vector<32x1xf32>
    %cst_1 = arith.constant 1.000000e+00 : f32
    %3 = vector.broadcast %cst_1 : f32 to vector<32x1xf32>
    %4 = arith.maximumf %2, %3 : vector<32x1xf32>
    %5 = vector.broadcast %4 : vector<32x1xf32> to vector<32x32xf32>
    %6 = arith.divf %0, %5 : vector<32x32xf32>
    %c0_2 = arith.constant 0 : index
    %c0_3 = arith.constant 0 : index
    %7 = vector.load %arg0[%c0_2, %c0_3] : memref<32x16xf32, #tpu.memory_space<vmem>>, vector<32x16xf32>
    %cst_4 = arith.constant dense<0.000000e+00> : vector<32x16xf32>
    %8 = tpu.matmul %6, %7, %cst_4 {dimension_numbers = #tpu.dot_dimension_numbers<[1], [0], [0], [1], [0, 0, 1, 1], [], []>} : vector<32x32xf32>, vector<32x16xf32>, vector<32x16xf32> -> vector<32x16xf32>
    %c0_5 = arith.constant 0 : index
    %c0_6 = arith.constant 0 : index
    %9 = vector.load %arg4[%c0_5, %c0_6] : memref<8x32xf32, #tpu.memory_space<vmem>>, vector<1x32xf32>
    %c0_7 = arith.constant 0 : index
    %c0_8 = arith.constant 0 : index
    %10 = vector.load %arg3[%c0_7, %c0_8] : memref<16x32xf32, #tpu.memory_space<vmem>>, vector<16x32xf32>
    %cst_9 = arith.constant dense<0.000000e+00> : vector<32x32xf32>
    %11 = tpu.matmul %8, %10, %cst_9 {dimension_numbers = #tpu.dot_dimension_numbers<[1], [0], [0], [1], [0, 0, 1, 1], [], []>} : vector<32x16xf32>, vector<16x32xf32>, vector<32x32xf32> -> vector<32x32xf32>
    %12 = vector.broadcast %9 : vector<1x32xf32> to vector<32x32xf32>
    %13 = arith.addf %11, %12 : vector<32x32xf32>
    %cst_10 = arith.constant 0.000000e+00 : f32
    %14 = vector.broadcast %cst_10 : f32 to vector<32x32xf32>
    %15 = arith.maximumf %13, %14 : vector<32x32xf32>
    %16 = tpu.iota {dimensions = array<i32: 0>} : vector<4x32xi32>
    %c0_11 = arith.constant 0 : index
    %c0_12 = arith.constant 0 : index
    %17 = vector.load %arg2[%c0_11, %c0_12] : memref<1x32xi32, #tpu.memory_space<vmem>>, vector<1x32xi32>
    %18 = vector.shape_cast %17 : vector<1x32xi32> to vector<1x32xi32>
    %19 = vector.broadcast %18 : vector<1x32xi32> to vector<4x32xi32>
    %20 = arith.cmpi eq, %16, %19 : vector<4x32xi32>
    %21 = arith.extui %20 : vector<4x32xi1> to vector<4x32xi32>
    %22 = arith.sitofp %21 : vector<4x32xi32> to vector<4x32xf32>
    %cst_13 = arith.constant dense<0.000000e+00> : vector<4xf32>
    %23 = vector.multi_reduction <add>, %22, %cst_13 [1] : vector<4x32xf32> to vector<4xf32>
    %24 = vector.shape_cast %23 : vector<4xf32> to vector<4x1xf32>
    %cst_14 = arith.constant 1.000000e+00 : f32
    %25 = vector.broadcast %cst_14 : f32 to vector<4x1xf32>
    %26 = arith.maximumf %24, %25 : vector<4x1xf32>
    %27 = vector.broadcast %26 : vector<4x1xf32> to vector<4x32xf32>
    %28 = arith.divf %22, %27 : vector<4x32xf32>
    %cst_15 = arith.constant dense<0.000000e+00> : vector<4x32xf32>
    %29 = tpu.matmul %28, %15, %cst_15 {dimension_numbers = #tpu.dot_dimension_numbers<[1], [0], [0], [1], [0, 0, 1, 1], [], []>} : vector<4x32xf32>, vector<32x32xf32>, vector<4x32xf32> -> vector<4x32xf32>
    %30 = vector.extract_strided_slice %29 {offsets = [0, 0], sizes = [2, 32], strides = [1, 1]} : vector<4x32xf32> to vector<2x32xf32>
    %31 = vector.extract_strided_slice %29 {offsets = [2, 0], sizes = [2, 32], strides = [1, 1]} : vector<4x32xf32> to vector<2x32xf32>
    %32 = arith.subf %30, %31 : vector<2x32xf32>
    %33 = math.absf %32 : vector<2x32xf32>
    %34 = arith.mulf %30, %31 : vector<2x32xf32>
    %35 = tpu.concatenate %30, %31, %33, %34 in 1 : vector<2x32xf32>, vector<2x32xf32>, vector<2x32xf32>, vector<2x32xf32> -> vector<2x128xf32>
    %c1 = arith.constant 1 : index
    %c0_16 = arith.constant 0 : index
    %36 = vector.load %arg4[%c1, %c0_16] : memref<8x32xf32, #tpu.memory_space<vmem>>, vector<1x32xf32>
    %c0_17 = arith.constant 0 : index
    %c0_18 = arith.constant 0 : index
    %37 = vector.load %arg5[%c0_17, %c0_18] : memref<128x32xf32, #tpu.memory_space<vmem>>, vector<128x32xf32>
    %cst_19 = arith.constant dense<0.000000e+00> : vector<2x32xf32>
    %38 = tpu.matmul %35, %37, %cst_19 {dimension_numbers = #tpu.dot_dimension_numbers<[1], [0], [0], [1], [0, 0, 1, 1], [], []>} : vector<2x128xf32>, vector<128x32xf32>, vector<2x32xf32> -> vector<2x32xf32>
    %39 = vector.broadcast %36 : vector<1x32xf32> to vector<2x32xf32>
    %40 = arith.addf %38, %39 : vector<2x32xf32>
    %cst_20 = arith.constant 0.000000e+00 : f32
    %41 = vector.broadcast %cst_20 : f32 to vector<2x32xf32>
    %42 = arith.maximumf %40, %41 : vector<2x32xf32>
    %c2 = arith.constant 2 : index
    %c0_21 = arith.constant 0 : index
    %43 = vector.load %arg4[%c2, %c0_21] : memref<8x32xf32, #tpu.memory_space<vmem>>, vector<1x32xf32>
    %c3 = arith.constant 3 : index
    %c0_22 = arith.constant 0 : index
    %44 = vector.load %arg4[%c3, %c0_22] : memref<8x32xf32, #tpu.memory_space<vmem>>, vector<1x1xf32>
    %45 = vector.broadcast %43 : vector<1x32xf32> to vector<2x32xf32>
    %46 = arith.mulf %42, %45 : vector<2x32xf32>
    %cst_23 = arith.constant dense<0.000000e+00> : vector<2xf32>
    %47 = vector.multi_reduction <add>, %46, %cst_23 [1] : vector<2x32xf32> to vector<2xf32>
    %48 = vector.shape_cast %47 : vector<2xf32> to vector<2x1xf32>
    %49 = vector.broadcast %44 : vector<1x1xf32> to vector<2x1xf32>
    %50 = arith.addf %48, %49 : vector<2x1xf32>
    %51 = tpu.iota {dimensions = array<i32: 0>} : vector<2x2xi32>
    %52 = tpu.iota {dimensions = array<i32: 1>} : vector<2x2xi32>
    %53 = arith.cmpi eq, %51, %52 : vector<2x2xi32>
    %54 = arith.extui %53 : vector<2x2xi1> to vector<2x2xi32>
    %55 = arith.sitofp %54 : vector<2x2xi32> to vector<2x2xf32>
    %56 = vector.broadcast %50 : vector<2x1xf32> to vector<2x2xf32>
    %57 = arith.mulf %56, %55 : vector<2x2xf32>
    %cst_24 = arith.constant dense<0.000000e+00> : vector<2xf32>
    %58 = vector.multi_reduction <add>, %57, %cst_24 [0] : vector<2x2xf32> to vector<2xf32>
    %59 = vector.shape_cast %58 : vector<2xf32> to vector<1x2xf32>
    %c0_25 = arith.constant 0 : index
    %c0_26 = arith.constant 0 : index
    %60 = vector.load %arg6[%c0_25, %c0_26] : memref<1x2xf32, #tpu.memory_space<vmem>>, vector<1x2xf32>
    tpu.vector_store %arg6[%c0_25, %c0_26], %59 {strides = array<i32>} : memref<1x2xf32, #tpu.memory_space<vmem>>, vector<1x2xf32>,
    return
  }
}

</mosaic_0001>

<bundles_post_ra>
// kernel: graph_similarity_forward.1
= control target key start
LH: loop header
LB: loop body
LE: loop exit
PB: predicated region body
PF: predicated region fallthrough
CT: control target
= control target key end

     0   :  { %11 = vsyncpa [#allocation3], 0  ;;  %s948_s0 = inlined_call_operand.vmem [shape: f32[32,16], index: 0, kind: input, shape index: {}]   ;;  %s949_s1 = inlined_call_operand.hbm [shape: f32[32,32], index: 1, kind: input, shape index: {}]   ;;  %s950_s2 = inlined_call_operand.vmem [shape: s32[1,32], index: 2, kind: input, shape index: {}]   ;;  %s951_s3 = inlined_call_operand.vmem [shape: f32[16,32], index: 3, kind: input, shape index: {}]   ;;  %s952_s4 = inlined_call_operand.vmem [shape: f32[8,32], index: 4, kind: input, shape index: {}]   ;;  %s953_s5 = inlined_call_operand.vmem [shape: f32[128,32], index: 5, kind: input, shape index: {}]   ;;  %s954_s6 = inlined_call_operand.hbm [shape: f32[1,2], index: 6, kind: output, shape index: {}]  }
   0x1   :  { %12 = vsyncpa [#allocation4], 0  ;;  %s767_s21 = smov [#allocation2]   ;;  %s719_s25 = scalar_lea.hbm %s949_s1, 512 }
   0x2   :  { %s20_s22 = sshll.u32 %s767_s21, 4  ;;  %p720_p0 = scmp.ne.s32.totalorder %s949_s1, %s719_s25  ;;  %s21_s22 = int_to_ptr.vmem [resolvable:$true] %s20_s22 }
   0x3   :  { %p723_p1 = scmp.lt.u32.totalorder %s719_s25, %s949_s1 }
   0x5   :  { %p725_p2 = pnand %p723_p1, %p720_p0 }
   0x7   :  { %728 = shalt.err (!%p725_p2)
}
   0x8   :  { %s729_s30 = scalar_lea.vmem %s21_s22, 512  ;;  %p734_p4 = scmp.lt.s32.totalorder %s21_s22, %s21_s22 }
   0x9   :  { %p730_p3 = scmp.ne.s32.totalorder %s21_s22, %s729_s30  ;;  %p735_p5 = scmp.lt.s32.totalorder %s729_s30, %s729_s30 }
   0xb   :  { %p736_p6 = por %p735_p5, %p734_p4 }
   0xd   :  { %p737_p7 = pnand %p736_p6, %p730_p3 }
   0xf   :  { %740 = shalt.err (!%p737_p7)
}
  0x10   :  { %s768_s7 = smov 128   ;;  %s769_s8 = smov 8  }
  0x11   :  { %26 = dma.hbm_to_vmem [thread:$0]  %s949_s1, 512, %s21_s22, [#allocation3], %s768_s7, %s768_s7, %s769_s8  }
  0x12   :  { %763 = dma.done.wait [#allocation3], 512  }
  0x13   :  { %764 = vsyncadd [#allocation3], 4294966784  ;;  %vm42_vm0 = vcmask 261120   ;;  %v38_v0 = vld [vmem:[#allocation2] sm:$0xff]  ;;  %v40_v1 = vld [vmem:[#allocation2 + $0x10] sm:$0xff]  ;;  %v277_v33 = vlaneseq  ;;  %vm287_vm1 = vcmask 257024  }
  0x14   :  { %v39_v2 = vld [vmem:[#allocation2 + $0x8] sm:$0xff]  ;;  %v43_v3 = vsel %vm42_vm0, %v38_v0, 0.0  ;;  %v49_v4 = vsel %vm42_vm0, %v40_v1, 0.0  ;;  %v41_v5 = vld [vmem:[#allocation2 + $0x18] sm:$0xff]  ;;  %v67_v8 = vld [vmem:[%s948_s0] sm:$0xff]  ;;  %v770_v36 = vmov 0.0  }
  0x15   :  { %44 = vadd.xlane.f32.xlu0 %v43_v3  ;;  %50 = vadd.xlane.f32.xlu1 %v49_v4  ;;  %v46_v6 = vsel %vm42_vm0, %v39_v2, 0.0  ;;  %v52_v7 = vsel %vm42_vm0, %v41_v5, 0.0  ;;  %v68_v9 = vld [vmem:[%s948_s0 + $0x8] sm:$0xff]  ;;  %v69_v10 = vld [vmem:[%s948_s0 + $0x10] sm:$0xff]  ;;  %v70_v12 = vld [vmem:[%s948_s0 + $0x18] sm:$0xff]  ;;  %v855_v35 = vshrl.u32 %v277_v33, 7 }
  0x16   :  { %v655_v11 = vpack.c.bf16 %v68_v9, %v67_v8  ;;  %v659_v13 = vpack.c.bf16 %v70_v12, %v69_v10  ;;  %v169_v14 = vld [vmem:[%s951_s3] sm:$0xff]  ;;  %v170_v15 = vld [vmem:[%s951_s3 + $0x8] sm:$0xff]  ;;  %vm175_vm3 = vcmask 130048   ;;  %v771_v43 = vmov 0.0|0.0   ;;  %v393_v3 = vld [vmem:[%s953_s5 + $0x18] sm:$0xff]  ;;  %s773_s27 = smov 32  }
  0x17   :  { %v663_v16 = vpack.c.bf16 %v170_v15, %v169_v14  ;;  %v542_v34 = vld [vmem:[%s950_s2] ss:$0 sm:$0xff]  ;;  %673 = vmatprep.subr.bf16.mxu0 %v771_v43  ;;  %vm772_vm4 = vmmov 0   ;;  %v396_v8 = vld [vmem:[%s953_s5 + $0x30] sm:$0xff]  ;;  %v397_v9 = vld [vmem:[%s953_s5 + $0x38] sm:$0xff]  ;;  %s774_s28 = smov 96  }
  0x18   :  { %656 = vmatprep.subr.bf16.mxu1 %v655_v11  ;;  %vm284_vm2 = vcmp.eq.s32.totalorder %v855_v35, %v542_v34  ;;  %652 = vmatprep.mubr.msk.f32.mxu0 %vm772_vm4, %v770_v36  ;;  %v537_v46 = vld [vmem:[%s952_s4] ss:$0 sm:$0xff]  ;;  %v683_v10 = vpack.c.bf16 %v397_v9, %v396_v8  ;;  %v399_v12 = vld [vmem:[%s953_s5 + $0x48] sm:$0xff]  ;;  %v400_v14 = vld [vmem:[%s953_s5 + $0x50] sm:$0xff]  ;;  %s775_s29 = smov 64   ;;  %vm385_vm5 = vcmask 523264  }
  0x19   :  { %47 = vadd.xlane.f32.xlu0 %v46_v6  ;;  %53 = vadd.xlane.f32.xlu1 %v52_v7  ;;  %v543_v37 = vsel %vm284_vm2, 1.0, %v770_v36  ;;  %v390_v63 = vld [vmem:[%s953_s5] sm:$0xff]  ;;  %v395_v6 = vld [vmem:[%s953_s5 + $0x28] sm:$0xff]  ;;  %v401_v15 = vld [vmem:[%s953_s5 + $0x58] sm:$0xff]  ;;  %vm387_vm6 = vcmask 785408   ;;  %vm488_vm7 = vcmask 254976  }
  0x1a   :  { %658 = vmatpush3.bf16.msra.mxu1 %v655_v11  ;;  %v288_v38 = vsel %vm287_vm1, %v543_v37, 0.0  ;;  %v398_v11 = vld [vmem:[%s953_s5 + $0x40] sm:$0xff]  ;;  %vm508_vm9 = vcmask 9216   ;;  %s777_s1 = smov [#allocation5]   ;;  %vm516_vm10 = vcmask 8192  }
  0x1b   :  { %660 = vmatprep.subr.bf16.mxu1 %v659_v13  ;;  %s524_s11 = sshll.u32 %s777_s1, 4  ;;  %s525_s11 = int_to_ptr.vmem [resolvable:$true] %s524_s11 }
  0x1c   :  { %s745_s12 = scalar_lea.vmem %s525_s11, 32  ;;  %p746_p9 = scmp.lt.s32.totalorder %s525_s11, %s525_s11 }
  0x1d   :  { %289 = vadd.xlane.f32.xlu0 %v288_v38  ;;  %v545_v38 = vld [vmem:[%s952_s4 + $0x1] ss:$0 sm:$0xff] }
  0x1e   :  { %662 = vmatpush3.bf16.msra.mxu1 %v659_v13  ;;  %v686_v13 = vpack.c.bf16 %v399_v12, %v398_v11 }
  0x1f   :  { %664 = vmatprep.subr.bf16.mxu1 %v663_v16 }
  0xa2   :  { %v45_v17 = vpop.xlane.xlu0 %44  ;;  %v51_v18 = vpop.xlane.xlu1 %50 }
  0xa3   :  { %v55_v19 = vmax.f32 %v45_v17, 1.0  ;;  %v57_v20 = vmax.f32 %v51_v18, 1.0  ;;  %v402_v17 = vld [vmem:[%s953_s5 + $0x60] sm:$0xff]  ;;  %v403_v18 = vld [vmem:[%s953_s5 + $0x68] sm:$0xff] }
  0xa5   :  { %709 = vrcp.f32 %v55_v19  ;;  %v692_v19 = vpack.c.bf16 %v403_v18, %v402_v17 }
  0xa6   :  { %711 = vrcp.f32 %v57_v20  ;;  %v48_v21 = vpop.xlane.xlu0 %47  ;;  %v54_v22 = vpop.xlane.xlu1 %53  ;;  %v404_v20 = vld [vmem:[%s953_s5 + $0x70] sm:$0xff] }
  0xa7   :  { %v56_v23 = vmax.f32 %v48_v21, 1.0  ;;  %v58_v24 = vmax.f32 %v54_v22, 1.0  ;;  %v405_v21 = vld [vmem:[%s953_s5 + $0x78] sm:$0xff] }
  0xa8   :  { %v695_v22 = vpack.c.bf16 %v405_v21, %v404_v20 }
  0xa9   :  { %713 = vrcp.f32 %v56_v23 }
  0xaa   :  { %715 = vrcp.f32 %v58_v24  ;;  %v290_v44 = vpop.xlane.xlu0 %289 }
  0xab   :  { %v291_v45 = vmax.f32 %v290_v44, 1.0 }
  0xad   :  { %717 = vrcp.f32 %v291_v45 }
  0xaf   :  { %v710_v25 = vpop.eup %709 }
  0xb0   :  { %v712_v26 = vpop.eup %711  ;;  %v60_v27 = vmul.f32 %v710_v25, %v38_v0  ;;  %v391_v0 = vld [vmem:[%s953_s5 + $0x8] sm:$0xff] }
  0xb1   :  { %v64_v29 = vmul.f32 %v712_v26, %v40_v1  ;;  %v392_v1 = vld [vmem:[%s953_s5 + $0x10] sm:$0xff] }
  0xb2   :  { %593 = vmatprep.mubr.msk.f32.mxu1 %vm42_vm0, %v60_v27  ;;  %v677_v4 = vpack.c.bf16 %v393_v3, %v392_v1 }
  0xb3   :  { %v714_v28 = vpop.eup %713 }
  0xb4   :  { %v716_v30 = vpop.eup %715  ;;  %v62_v31 = vmul.f32 %v714_v28, %v39_v2  ;;  %v674_v2 = vpack.c.bf16 %v391_v0, %v390_v63 }
  0xb5   :  { %v66_v32 = vmul.f32 %v716_v30, %v41_v5  ;;  %v394_v5 = vld [vmem:[%s953_s5 + $0x20] sm:$0xff] }
  0xb6   :  { %594 = vmatmul.mubr.msk.f32.vlgmr.msra.gmra.mrb[0].mxu1 %vm42_vm0, %v62_v31  ;;  %675 = vmatpush3.bf16.msra.mxu0 %v674_v2  ;;  %v680_v7 = vpack.c.bf16 %v395_v6, %v394_v5 }
  0xb7   :  { %596 = vmatprep.mubr.msk.f32.mxu1 %vm42_vm0, %v64_v29  ;;  %666 = vmatpush3.bf16.msra.mxu1 %v663_v16  ;;  %v718_v59 = vpop.eup %717  ;;  %v689_v16 = vpack.c.bf16 %v401_v15, %v400_v14 }
  0xb8   :  { %667 = vmatprep.subr.bf16.mxu1 %v771_v43  ;;  %v293_v62 = vmul.f32 %v718_v59, %v543_v37  ;;  %676 = vmatprep.subr.bf16.mxu0 %v771_v43 }
  0xba   :  { %597 = vmatmul.mubr.msk.f32.gmra.mrb[2].mxu1 %vm42_vm0, %v66_v32  ;;  %678 = vmatpush3.bf16.msra.mxu0 %v677_v4 }
  0xbb   :  { %679 = vmatprep.subr.bf16.mxu0 %v771_v43 }
  0xbe   :  { %681 = vmatpush3.bf16.msra.mxu0 %v680_v7 }
  0xbf   :  { %682 = vmatprep.subr.bf16.mxu0 %v771_v43 }
  0xc2   :  { %684 = vmatpush3.bf16.msra.mxu0 %v683_v10 }
  0xc3   :  { %685 = vmatprep.subr.bf16.mxu0 %v771_v43 }
  0xc6   :  { %687 = vmatpush3.bf16.msra.mxu0 %v686_v13 }
  0xc7   :  { %688 = vmatprep.subr.bf16.mxu0 %v771_v43 }
  0xca   :  { %690 = vmatpush3.bf16.msra.mxu0 %v689_v16 }
  0xcb   :  { %691 = vmatprep.subr.bf16.mxu0 %v771_v43 }
  0xce   :  { %693 = vmatpush3.bf16.msra.mxu0 %v692_v19 }
  0xcf   :  { %694 = vmatprep.subr.bf16.mxu0 %v771_v43 }
  0xd2   :  { %696 = vmatpush3.bf16.msra.mxu0 %v695_v22 }
 0x189   :  { %v595_v39 = vpop.f32.mrb[0].mxu1 }
 0x18a   :  { %v149_v40 = vpop.f32.mrb[1].mxu1 }
 0x18b   :  { %603 = vmatprep.mubr.msk.f32.mxu1 %vm175_vm3, %v149_v40 }
 0x18c   :  { %604 = vmatmul.mubr.msk.f32.vlgmr.msra.gmra.mrb[4].mxu1 %vm175_vm3, %v595_v39 }
 0x18d   :  { %v598_v41 = vpop.f32.mrb[2].mxu1 }
 0x18e   :  { %v159_v42 = vpop.f32.mrb[3].mxu1 }
 0x18f   :  { %606 = vmatprep.mubr.msk.f32.mxu1 %vm175_vm3, %v159_v42  ;;  %v546_v42 = vld [vmem:[%s952_s4 + $0x2] ss:$0 sm:$0xff] }
 0x190   :  { %607 = vmatmul.mubr.msk.f32.gmra.mrb[6].mxu1 %vm175_vm3, %v598_v41 }
 0x191   :  { %617 = vmatprep.mubr.msk.f32.mxu1 %vm772_vm4, %v770_v36 }
 0x25f   :  { %v605_v47 = vpop.f32.mrb[4].mxu1 }
 0x260   :  { %v260_v48 = vadd.f32 %v605_v47, %v537_v46  ;;  %v254_v49 = vpop.f32.mrb[5].mxu1  ;;  %v547_v47 = vld [vmem:[%s952_s4 + $0x3] ss:$0 sm:$0xff]  ;;  %s741_s4 = scalar_lea.vmem %s525_s11, 16 }
 0x261   :  { %v255_v50 = vadd.f32 %v537_v46, %v254_v49  ;;  %p742_p8 = scmp.ne.s32.totalorder %s525_s11, %s741_s4  ;;  %p747_p10 = scmp.lt.s32.totalorder %s745_s12, %s741_s4 }
 0x262   :  { %v274_v51 = vmax.f32 %v260_v48, 0.0 }
 0x263   :  { %v273_v52 = vmax.f32 %v255_v50, 0.0  ;;  %v608_v53 = vpop.f32.mrb[6].mxu1  ;;  %v498_v50 = vand.u32 127, %v277_v33  ;;  %p748_p11 = por %p747_p10, %p746_p9 }
 0x264   :  { %v270_v54 = vadd.f32 %v608_v53, %v537_v46  ;;  %v264_v55 = vpop.f32.mrb[7].mxu1 }
 0x265   :  { %v668_v56 = vpack.c.bf16 %v274_v51, %v273_v52  ;;  %v265_v57 = vadd.f32 %v537_v46, %v264_v55  ;;  %v776_v46 = vmov 0   ;;  %vm499_vm8 = vcmp.eq.s32.totalorder %v855_v35, %v498_v50  ;;  %p749_p12 = pnand %p748_p11, %p742_p8 }
 0x266   :  { %v276_v58 = vmax.f32 %v270_v54, 0.0  ;;  %708 = vset.pattern.permute.xlu0 %v776_v46  ;;  %v548_v51 = vsel %vm499_vm8, 1.0, %v770_v36 }
 0x267   :  { %v275_v60 = vmax.f32 %v265_v57, 0.0  ;;  %669 = vmatpush3.bf16.msra.mxu1 %v668_v56 }
 0x268   :  { %670 = vmatprep.subr.bf16.mxu1 %v771_v43 }
 0x269   :  { %v671_v61 = vpack.c.bf16 %v276_v58, %v275_v60 }
 0x26b   :  { %672 = vmatpush3.bf16.msra.mxu1 %v671_v61 }
 0x26e   :  { %618 = vmatmul.mubr.msk.f32.vlgmr.msra.gmra.mrb[8].mxu1 %vm42_vm0, %v293_v62 }
 0x341   :  { %v363_v23 = vpop.f32.mrb[8].mxu1 }
 0x342   :  { %v619_v24 = vpop.f32.mrb[9].mxu1  ;;  %v368_v25 = vrot.slane %v363_v23, 2 }
 0x344   :  { %373 = vrot.lane.b32.xlu1 %v368_v25, %s773_s27  ;;  %v370_v26 = vsub.f32 %v363_v23, %v368_v25  ;;  %v372_v27 = vmul.f32 %v368_v25, %v363_v23 }
 0x346   :  { %v371_v28 = vand.u32 2147483647, %v370_v26 }
 0x348   :  { %381 = vrot.lane.b32.xlu1 %v372_v27, %s774_s28  ;;  %377 = vrot.lane.b32.xlu0 %v371_v28, %s775_s29 }
 0x3b6   :  { %v374_v29 = vpop.permute.xlu1 %373 }
 0x3b7   :  { %v384_v30 = vsel %vm42_vm0, %v363_v23, %v374_v29 }
 0x3ba   :  { %v382_v31 = vpop.permute.xlu1 %381  ;;  %v378_v32 = vpop.permute.xlu0 %377 }
 0x3bb   :  { %v386_v34 = vsel %vm385_vm5, %v384_v30, %v378_v32 }
 0x3bc   :  { %v388_v37 = vsel %vm387_vm6, %v386_v34, %v382_v31 }
 0x3bd   :  { %653 = vmatmul.mubr.f32.vlgmr.msra.gmra.mrb[0].mxu0 %v388_v37 }
 0x490   :  { %v476_v39 = vpop.f32.mrb[0].mxu0 }
 0x491   :  { %v477_v40 = vadd.f32 %v545_v38, %v476_v39  ;;  %v654_v41 = vpop.f32.mrb[1].mxu0 }
 0x493   :  { %v480_v43 = vmax.f32 %v477_v40, 0.0 }
 0x495   :  { %v487_v44 = vmul.f32 %v546_v42, %v480_v43 }
 0x497   :  { %v489_v45 = vsel %vm488_vm7, %v487_v44, 0.0 }
 0x498   :  { %490 = vadd.xlane.f32.xlu1 %v489_v45 }
 0x525   :  { %v491_v48 = vpop.xlane.xlu1 %490 }
 0x526   :  { %v496_v49 = vadd.f32 %v547_v47, %v491_v48 }
 0x528   :  { %504 = vperm.xlu0 %708, %v496_v49  }
 0x5a7   :  { %v505_v52 = vpop.permute.xlu0 %504 }
 0x5a8   :  { %v507_v53 = vmul.f32 %v548_v51, %v505_v52 }
 0x5aa   :  { %v509_v54 = vsel %vm508_vm9, %v507_v53, 0.0 }
 0x5ab   :  { %v510_v55 = vrot.slane %v509_v54, 4 }
 0x5ad   :  { %v511_v56 = vadd.f32 %v510_v55, %v509_v54 }
 0x5af   :  { %v512_v57 = vrot.slane %v511_v56, 2 }
 0x5b1   :  { %v513_v58 = vadd.f32 %v512_v57, %v511_v56 }
 0x5b3   :  { %v514_v59 = vrot.slane %v513_v58, 1 }
 0x5b5   :  { %v515_v60 = vadd.f32 %v514_v59, %v513_v58 }
 0x5b7   :  { %517 = vst.msk [vmem:[#allocation5] sm:$0x1] %vm516_vm10, %v515_v60 }
 0x5b8   :  { %752 = shalt.err (!%p749_p12)
}
 0x5b9   :  { %s753_s15 = scalar_lea.hbm %s954_s6, 16 }
 0x5ba   :  { %p754_p13 = scmp.ne.s32.totalorder %s954_s6, %s753_s15  ;;  %p757_p0 = scmp.lt.u32.totalorder %s753_s15, %s954_s6 }
 0x5bc   :  { %p759_p1 = pnand %p757_p0, %p754_p13 }
 0x5be   :  { %762 = shalt.err (!%p759_p1)
}
 0x5bf   :  { %527 = dma.vmem_to_hbm [thread:$0]  %s525_s11, 16, %s954_s6, [#allocation4]  }
 0x5c0   :  { %765 = dma.done.wait [#allocation4], 16  }
 0x5c1   :  { %766 = vsyncadd [#allocation4], 4294967280 }
 0x5c2   :  { %531 = vsyncpa [#allocation3], 1 }
 0x5c3   :  { %532 = vsyncpa [#allocation4], 1 }

</bundles_post_ra>
